<compile_context>
chip_gen: v6e
topology: v6e:2x2x1
jax: 0.10.0
libtpu: 0.0.40
codegen_flags: <defaults>
</compile_context>

<pallas_src>
import jax
import jax.numpy as jnp
import numpy as np
from jax import lax
from jax.experimental import pallas as pl
from jax.experimental.pallas import tpu as pltpu


def _downsample_row_kernel(p0_ref, p1_ref, w_ref, b_ref, out_ref):
    """One output row (all OW columns, all fused channels) per grid step.

    p0_ref, p1_ref: (1, 1, 4, OW+1, C)  parity-plane rows i (dh=0) / i+1 (dh=1)
    w_ref         : (16, C, OCp)        fused per-tap weights (conv | 0.25*pool)
    b_ref         : (1, OCp)            fused bias (f32)
    out_ref       : (1, 1, OW, OCp)
    """
    ow = out_ref.shape[2]
    ocp = out_ref.shape[3]
    acc = jnp.zeros((ow, ocp), jnp.float32)
    for p in range(4):                       # p = 2*ph + pw  (input parity)
        for dh in range(2):
            pref = p0_ref if dh == 0 else p1_ref
            for dw in range(2):
                t = (p * 2 + dh) * 2 + dw    # tap id, matches wrapper ordering
                lhs = pref[0, 0, p, pl.ds(dw, ow), :]          # (OW, C)
                acc = acc + jnp.dot(lhs, w_ref[t],
                                    preferred_element_type=jnp.float32)
    out_ref[0, 0] = (acc + b_ref[...]).astype(out_ref.dtype)


def downsample_forward(x_nchw, wc_oihw, bc, wp_oihw, bp, *,
                       compute_dtype=jnp.bfloat16,
                       out_dtype=None,
                       out_layout="NCHW",
                       vmem_limit_bytes=None):
    """Forward pass of Downsample (use_conv=True, use_pool=True, k=2).

    x_nchw : (N, C, H, W) with H, W even.
    wc_oihw: (OC1, C, 4, 4), bc: (OC1,)   conv branch
    wp_oihw: (OC2, C, 1, 1), bp: (OC2,)   avg-pool + 1x1-conv branch
    Returns (N, OC1+OC2, H//2, W//2) in `out_dtype` (NCHW) or the NHWC
    equivalent when out_layout == "NHWC".
    """
    N, C, H, W = x_nchw.shape
    assert H % 2 == 0 and W % 2 == 0, "k=2 downsample expects even H, W"
    OC1, OC2 = wc_oihw.shape[0], wp_oihw.shape[0]
    OC = OC1 + OC2
    OH, OW = H // 2, W // 2
    out_dtype = jnp.float32 if out_dtype is None else out_dtype
    # Lane-dense output stores: pad the (tiny) fused weights so the channel
    # dim is at least one full 128-lane tile; pad columns sliced off below.
    OCp = OC if OC >= 128 else 128

    # ---- glue: NCHW -> NHWC, zero-pad, split into 4 parity planes ----------
    # planes[n, a, p, b, c] = xpad[n, 2a+ph, 2b+pw, c],  p = 2*ph + pw.
    x = jnp.transpose(x_nchw, (0, 2, 3, 1))                    # (N, H, W, C)
    xpad = jnp.pad(x, ((0, 0), (1, 1), (1, 1), (0, 0)))        # (N, H+2, W+2, C)
    planes = jnp.stack([xpad[:, ph::2, pw::2, :]
                        for ph in (0, 1) for pw in (0, 1)], axis=2)
    planes = planes.astype(compute_dtype)                      # (N, OH+1, 4, OW+1, C)

    # ---- glue: fused per-tap weights (conv branch | avg-pool*1x1 branch) ----
    # Tap (ph, pw, dh, dw) is conv tap (kh, kw) = (ph+2dh, pw+2dw); the 2x2
    # avg-pool window of output pixel (i, j) is exactly taps (kh, kw) in
    # {1,2}x{1,2}, so 0.25*wp lands on those four taps.
    wc_t = jnp.transpose(wc_oihw, (2, 3, 1, 0)).astype(jnp.float32)   # (4,4,C,OC1)
    wp_mat = wp_oihw.reshape(OC2, C).T.astype(jnp.float32)            # (C, OC2)
    zeros_pool = jnp.zeros((C, OC2), jnp.float32)
    mats = []
    for ph in (0, 1):
        for pw in (0, 1):
            for dh in (0, 1):
                for dw in (0, 1):
                    kh, kw = ph + 2 * dh, pw + 2 * dw
                    pool_part = (0.25 * wp_mat
                                 if (1 <= kh <= 2 and 1 <= kw <= 2) else zeros_pool)
                    m = jnp.concatenate([wc_t[kh, kw], pool_part], axis=1)   # (C, OC)
                    if OCp != OC:
                        m = jnp.pad(m, ((0, 0), (0, OCp - OC)))
                    mats.append(m)
    w_taps = jnp.stack(mats, axis=0).astype(compute_dtype)               # (16, C, OCp)
    # NOTE: bf16 also quantizes the 0.25-scaled pooling weights (documented).
    b_comb = jnp.concatenate([bc, bp]).astype(jnp.float32)
    if OCp != OC:
        b_comb = jnp.pad(b_comb, (0, OCp - OC))
    b_comb = b_comb.reshape(1, OCp)

    # ---- VMEM budget / compiler params --------------------------------------
    cbytes = jnp.dtype(compute_dtype).itemsize
    obytes = jnp.dtype(out_dtype).itemsize
    plane_blk = 4 * (OW + 1) * C * cbytes
    # 2 plane inputs x 2 pipeline buffers, resident weights+bias (x2: still
    # double-buffered by the pipeline), output block x2, f32 accumulator.
    # TODO(synk): single-buffer the resident weights/bias via
    #             pipeline_mode=pl.Buffered(1) once verified on all targets.
    need = (2 * 2 * plane_blk + 2 * (16 * C * OCp * cbytes + OCp * 4)
            + 2 * OW * OCp * obytes + OW * OCp * 4)
    need = int(need * 1.25) + (4 << 20)
    if vmem_limit_bytes is None:
        try:
            cap = int(pltpu.get_tpu_info().vmem_capacity_bytes)
        except Exception:
            cap = 64 * 1024 * 1024
        vmem_limit_bytes = max(32 * 1024 * 1024, min(need, (cap * 7) // 8))
        # TODO(synk): if `need` exceeds the cap (very large C*OC fused
        #             weights), split the tap loop over a K grid axis.

    cost = pl.CostEstimate(
        flops=2 * N * OH * OW * (16 * C) * OCp,
        bytes_accessed=int(2 * planes.size * cbytes + 16 * C * OCp * cbytes
                           + OCp * 4 + N * OH * OW * OCp * obytes),
        transcendentals=0)

    # TODO(synk): for small-C models where the ~0.35us/step overhead of the
    #             (N, OH) row grid matters, graduate to multi-row tiles with a
    #             manually DMA'd haloed plane slab (pltpu.make_async_copy).
    out = pl.pallas_call(
        _downsample_row_kernel,
        out_shape=jax.ShapeDtypeStruct((N, OH, OW, OCp), out_dtype),
        grid=(N, OH),
        in_specs=[
            # Same plane array twice: rows i (dh=0) and i+1 (dh=1); the +1 row
            # halo lives purely in the index maps.
            pl.BlockSpec((1, 1, 4, OW + 1, C), lambda n, i: (n, i, 0, 0, 0)),
            pl.BlockSpec((1, 1, 4, OW + 1, C), lambda n, i: (n, i + 1, 0, 0, 0)),
            pl.BlockSpec((16, C, OCp), lambda n, i: (0, 0, 0)),   # resident weights
            pl.BlockSpec((1, OCp), lambda n, i: (0, 0)),          # resident bias
        ],
        out_specs=pl.BlockSpec((1, 1, OW, OCp), lambda n, i: (n, i, 0, 0)),
        compiler_params=pltpu.CompilerParams(
            # TODO(synk): switch to pltpu.CORE_PARALLEL (or an explicit 2-core
            #             leading axis) for v7x megacore once verified.
            dimension_semantics=("parallel", "parallel"),
            vmem_limit_bytes=int(vmem_limit_bytes)),
        cost_estimate=cost,
    )(planes, planes, w_taps, b_comb)

    out = out if OCp == OC else out[..., :OC]        # (N, OH, OW, OC)
    if out_layout == "NHWC":
        return out
    return jnp.transpose(out, (0, 3, 1, 2))          # (N, OC, OH, OW)


def _reference(x_nchw, wc_oihw, bc, wp_oihw, bp):
    """Pure-JAX reference mirroring the PyTorch module."""
    conv = lax.conv_general_dilated(
        x_nchw, wc_oihw, window_strides=(2, 2), padding=((1, 1), (1, 1)),
        dimension_numbers=("NCHW", "OIHW", "NCHW"),
    ) + bc[None, :, None, None]
    N, C, H, W = x_nchw.shape
    avg = x_nchw.reshape(N, C, H // 2, 2, W // 2, 2).mean(axis=(3, 5))
    pool = jnp.einsum("nchw,oc->nohw", avg, wp_oihw.reshape(wp_oihw.shape[0], C))
    pool = pool + bp[None, :, None, None]
    return jnp.concatenate([conv, pool], axis=1)


if __name__ == "__main__":
    # Small shapes: batch=2, in_channels=4, H=W=16, out_channels=8 (4/branch).
    N, Cin, H, W = 2, 4, 16, 16
    Cout = 8
    OC1 = Cout // 2   # conv branch channels
    OC2 = Cout // 2   # pool branch channels

    key = jax.random.PRNGKey(0)
    kx, kwc, kbc, kwp, kbp = jax.random.split(key, 5)
    x = jax.random.normal(kx, (N, Cin, H, W), dtype=jnp.float32)

    fan_c = Cin * 4 * 4
    wc = jax.random.uniform(kwc, (OC1, Cin, 4, 4), jnp.float32,
                            -1.0 / np.sqrt(fan_c), 1.0 / np.sqrt(fan_c))
    bc = jax.random.uniform(kbc, (OC1,), jnp.float32,
                            -1.0 / np.sqrt(fan_c), 1.0 / np.sqrt(fan_c))
    fan_p = Cin
    wp = jax.random.uniform(kwp, (OC2, Cin, 1, 1), jnp.float32,
                            -1.0 / np.sqrt(fan_p), 1.0 / np.sqrt(fan_p))
    bp = jax.random.uniform(kbp, (OC2,), jnp.float32,
                            -1.0 / np.sqrt(fan_p), 1.0 / np.sqrt(fan_p))

    ref = jax.block_until_ready(_reference(x, wc, bc, wp, bp))

    # 1) Exact-precision path: f32 compute, f32 NCHW output.
    out_f32 = jax.block_until_ready(
        downsample_forward(x, wc, bc, wp, bp,
                           compute_dtype=jnp.float32,
                           out_dtype=jnp.float32, out_layout="NCHW"))
    assert out_f32.shape == (N, Cout, H // 2, W // 2), out_f32.shape
    np.testing.assert_allclose(np.asarray(out_f32), np.asarray(ref),
                               rtol=1e-5, atol=1e-5)

    # 2) Production default: bf16 streamed planes/weights, f32 NCHW output.
    out_bf16 = jax.block_until_ready(
        downsample_forward(x, wc, bc, wp, bp, compute_dtype=jnp.bfloat16))
    assert out_bf16.shape == (N, Cout, H // 2, W // 2), out_bf16.shape
    np.testing.assert_allclose(np.asarray(out_bf16), np.asarray(ref),
                               rtol=2e-2, atol=2e-2)

    # 3) Low-traffic path: bf16 output, NHWC layout (no glue transposes).
    out_nhwc = jax.block_until_ready(
        downsample_forward(x, wc, bc, wp, bp, compute_dtype=jnp.bfloat16,
                           out_dtype=jnp.bfloat16, out_layout="NHWC"))
    assert out_nhwc.shape == (N, H // 2, W // 2, Cout), out_nhwc.shape
    np.testing.assert_allclose(np.asarray(out_nhwc).astype(np.float32),
                               np.asarray(jnp.transpose(ref, (0, 2, 3, 1))),
                               rtol=3e-2, atol=3e-2)

    print("KERNEL_OK")
</pallas_src>

<mosaic_0001>
module attributes {stable_mosaic.version = 11 : i64} {
  func.func @_downsample_row_kernel(%arg0: i32, %arg1: i32, %arg2: memref<1x1x4x9x4xf32, #tpu.memory_space<vmem>>, %arg3: memref<1x1x4x9x4xf32, #tpu.memory_space<vmem>>, %arg4: memref<16x4x128xf32, #tpu.memory_space<vmem>>, %arg5: memref<1x128xf32, #tpu.memory_space<vmem>>, %arg6: memref<1x1x8x128xf32, #tpu.memory_space<vmem>>) attributes {dimension_semantics = [#tpu.dimension_semantics<parallel>, #tpu.dimension_semantics<parallel>], iteration_bounds = array<i64: 2, 8>, scalar_prefetch = 0 : i64, scratch_operands = 0 : i64, tpu.core_type = #tpu.core_type<tc>, window_params = [{transform_indices = @transform_0, window_bounds = array<i64: 1, 1, 4, 9, 4>}, {transform_indices = @transform_1, window_bounds = array<i64: 1, 1, 4, 9, 4>}, {pipeline_mode = #tpu.pipeline_mode<synchronous>, transform_indices = @transform_2, window_bounds = array<i64: 16, 4, 128>}, {pipeline_mode = #tpu.pipeline_mode<synchronous>, transform_indices = @transform_3, window_bounds = array<i64: 1, 128>}, {transform_indices = @transform_4, window_bounds = array<i64: 1, 1, 8, 128>}]} {
    %cst = arith.constant 0.000000e+00 : f32
    %0 = vector.broadcast %cst : f32 to vector<8x128xf32>
    %c0 = arith.constant 0 : index
    %c0_0 = arith.constant 0 : index
    %c0_1 = arith.constant 0 : index
    %c0_2 = arith.constant 0 : index
    %c0_3 = arith.constant 0 : index
    %1 = vector.load %arg2[%c0, %c0_0, %c0_1, %c0_2, %c0_3] : memref<1x1x4x9x4xf32, #tpu.memory_space<vmem>>, vector<1x1x1x8x4xf32>
    %2 = vector.shape_cast %1 : vector<1x1x1x8x4xf32> to vector<8x4xf32>
    %c0_4 = arith.constant 0 : index
    %c0_5 = arith.constant 0 : index
    %c0_6 = arith.constant 0 : index
    %3 = vector.load %arg4[%c0_4, %c0_5, %c0_6] : memref<16x4x128xf32, #tpu.memory_space<vmem>>, vector<1x4x128xf32>
    %4 = vector.shape_cast %3 : vector<1x4x128xf32> to vector<4x128xf32>
    %cst_7 = arith.constant dense<0.000000e+00> : vector<8x128xf32>
    %5 = tpu.matmul %2, %4, %cst_7 {dimension_numbers = #tpu.dot_dimension_numbers<[1], [0], [0], [1], [0, 0, 1, 1], [], []>} : vector<8x4xf32>, vector<4x128xf32>, vector<8x128xf32> -> vector<8x128xf32>
    %6 = arith.addf %0, %5 : vector<8x128xf32>
    %c0_8 = arith.constant 0 : index
    %c0_9 = arith.constant 0 : index
    %c0_10 = arith.constant 0 : index
    %c1 = arith.constant 1 : index
    %c0_11 = arith.constant 0 : index
    %7 = vector.load %arg2[%c0_8, %c0_9, %c0_10, %c1, %c0_11] : memref<1x1x4x9x4xf32, #tpu.memory_space<vmem>>, vector<1x1x1x8x4xf32>
    %8 = vector.shape_cast %7 : vector<1x1x1x8x4xf32> to vector<8x4xf32>
    %c1_12 = arith.constant 1 : index
    %c0_13 = arith.constant 0 : index
    %c0_14 = arith.constant 0 : index
    %9 = vector.load %arg4[%c1_12, %c0_13, %c0_14] : memref<16x4x128xf32, #tpu.memory_space<vmem>>, vector<1x4x128xf32>
    %10 = vector.shape_cast %9 : vector<1x4x128xf32> to vector<4x128xf32>
    %cst_15 = arith.constant dense<0.000000e+00> : vector<8x128xf32>
    %11 = tpu.matmul %8, %10, %cst_15 {dimension_numbers = #tpu.dot_dimension_numbers<[1], [0], [0], [1], [0, 0, 1, 1], [], []>} : vector<8x4xf32>, vector<4x128xf32>, vector<8x128xf32> -> vector<8x128xf32>
    %12 = arith.addf %6, %11 : vector<8x128xf32>
    %c0_16 = arith.constant 0 : index
    %c0_17 = arith.constant 0 : index
    %c0_18 = arith.constant 0 : index
    %c0_19 = arith.constant 0 : index
    %c0_20 = arith.constant 0 : index
    %13 = vector.load %arg3[%c0_16, %c0_17, %c0_18, %c0_19, %c0_20] : memref<1x1x4x9x4xf32, #tpu.memory_space<vmem>>, vector<1x1x1x8x4xf32>
    %14 = vector.shape_cast %13 : vector<1x1x1x8x4xf32> to vector<8x4xf32>
    %c2 = arith.constant 2 : index
    %c0_21 = arith.constant 0 : index
    %c0_22 = arith.constant 0 : index
    %15 = vector.load %arg4[%c2, %c0_21, %c0_22] : memref<16x4x128xf32, #tpu.memory_space<vmem>>, vector<1x4x128xf32>
    %16 = vector.shape_cast %15 : vector<1x4x128xf32> to vector<4x128xf32>
    %cst_23 = arith.constant dense<0.000000e+00> : vector<8x128xf32>
    %17 = tpu.matmul %14, %16, %cst_23 {dimension_numbers = #tpu.dot_dimension_numbers<[1], [0], [0], [1], [0, 0, 1, 1], [], []>} : vector<8x4xf32>, vector<4x128xf32>, vector<8x128xf32> -> vector<8x128xf32>
    %18 = arith.addf %12, %17 : vector<8x128xf32>
    %c0_24 = arith.constant 0 : index
    %c0_25 = arith.constant 0 : index
    %c0_26 = arith.constant 0 : index
    %c1_27 = arith.constant 1 : index
    %c0_28 = arith.constant 0 : index
    %19 = vector.load %arg3[%c0_24, %c0_25, %c0_26, %c1_27, %c0_28] : memref<1x1x4x9x4xf32, #tpu.memory_space<vmem>>, vector<1x1x1x8x4xf32>
    %20 = vector.shape_cast %19 : vector<1x1x1x8x4xf32> to vector<8x4xf32>
    %c3 = arith.constant 3 : index
    %c0_29 = arith.constant 0 : index
    %c0_30 = arith.constant 0 : index
    %21 = vector.load %arg4[%c3, %c0_29, %c0_30] : memref<16x4x128xf32, #tpu.memory_space<vmem>>, vector<1x4x128xf32>
    %22 = vector.shape_cast %21 : vector<1x4x128xf32> to vector<4x128xf32>
    %cst_31 = arith.constant dense<0.000000e+00> : vector<8x128xf32>
    %23 = tpu.matmul %20, %22, %cst_31 {dimension_numbers = #tpu.dot_dimension_numbers<[1], [0], [0], [1], [0, 0, 1, 1], [], []>} : vector<8x4xf32>, vector<4x128xf32>, vector<8x128xf32> -> vector<8x128xf32>
    %24 = arith.addf %18, %23 : vector<8x128xf32>
    %c0_32 = arith.constant 0 : index
    %c0_33 = arith.constant 0 : index
    %c1_34 = arith.constant 1 : index
    %c0_35 = arith.constant 0 : index
    %c0_36 = arith.constant 0 : index
    %25 = vector.load %arg2[%c0_32, %c0_33, %c1_34, %c0_35, %c0_36] : memref<1x1x4x9x4xf32, #tpu.memory_space<vmem>>, vector<1x1x1x8x4xf32>
    %26 = vector.shape_cast %25 : vector<1x1x1x8x4xf32> to vector<8x4xf32>
    %c4 = arith.constant 4 : index
    %c0_37 = arith.constant 0 : index
    %c0_38 = arith.constant 0 : index
    %27 = vector.load %arg4[%c4, %c0_37, %c0_38] : memref<16x4x128xf32, #tpu.memory_space<vmem>>, vector<1x4x128xf32>
    %28 = vector.shape_cast %27 : vector<1x4x128xf32> to vector<4x128xf32>
    %cst_39 = arith.constant dense<0.000000e+00> : vector<8x128xf32>
    %29 = tpu.matmul %26, %28, %cst_39 {dimension_numbers = #tpu.dot_dimension_numbers<[1], [0], [0], [1], [0, 0, 1, 1], [], []>} : vector<8x4xf32>, vector<4x128xf32>, vector<8x128xf32> -> vector<8x128xf32>
    %30 = arith.addf %24, %29 : vector<8x128xf32>
    %c0_40 = arith.constant 0 : index
    %c0_41 = arith.constant 0 : index
    %c1_42 = arith.constant 1 : index
    %c1_43 = arith.constant 1 : index
    %c0_44 = arith.constant 0 : index
    %31 = vector.load %arg2[%c0_40, %c0_41, %c1_42, %c1_43, %c0_44] : memref<1x1x4x9x4xf32, #tpu.memory_space<vmem>>, vector<1x1x1x8x4xf32>
    %32 = vector.shape_cast %31 : vector<1x1x1x8x4xf32> to vector<8x4xf32>
    %c5 = arith.constant 5 : index
    %c0_45 = arith.constant 0 : index
    %c0_46 = arith.constant 0 : index
    %33 = vector.load %arg4[%c5, %c0_45, %c0_46] : memref<16x4x128xf32, #tpu.memory_space<vmem>>, vector<1x4x128xf32>
    %34 = vector.shape_cast %33 : vector<1x4x128xf32> to vector<4x128xf32>
    %cst_47 = arith.constant dense<0.000000e+00> : vector<8x128xf32>
    %35 = tpu.matmul %32, %34, %cst_47 {dimension_numbers = #tpu.dot_dimension_numbers<[1], [0], [0], [1], [0, 0, 1, 1], [], []>} : vector<8x4xf32>, vector<4x128xf32>, vector<8x128xf32> -> vector<8x128xf32>
    %36 = arith.addf %30, %35 : vector<8x128xf32>
    %c0_48 = arith.constant 0 : index
    %c0_49 = arith.constant 0 : index
    %c1_50 = arith.constant 1 : index
    %c0_51 = arith.constant 0 : index
    %c0_52 = arith.constant 0 : index
    %37 = vector.load %arg3[%c0_48, %c0_49, %c1_50, %c0_51, %c0_52] : memref<1x1x4x9x4xf32, #tpu.memory_space<vmem>>, vector<1x1x1x8x4xf32>
    %38 = vector.shape_cast %37 : vector<1x1x1x8x4xf32> to vector<8x4xf32>
    %c6 = arith.constant 6 : index
    %c0_53 = arith.constant 0 : index
    %c0_54 = arith.constant 0 : index
    %39 = vector.load %arg4[%c6, %c0_53, %c0_54] : memref<16x4x128xf32, #tpu.memory_space<vmem>>, vector<1x4x128xf32>
    %40 = vector.shape_cast %39 : vector<1x4x128xf32> to vector<4x128xf32>
    %cst_55 = arith.constant dense<0.000000e+00> : vector<8x128xf32>
    %41 = tpu.matmul %38, %40, %cst_55 {dimension_numbers = #tpu.dot_dimension_numbers<[1], [0], [0], [1], [0, 0, 1, 1], [], []>} : vector<8x4xf32>, vector<4x128xf32>, vector<8x128xf32> -> vector<8x128xf32>
    %42 = arith.addf %36, %41 : vector<8x128xf32>
    %c0_56 = arith.constant 0 : index
    %c0_57 = arith.constant 0 : index
    %c1_58 = arith.constant 1 : index
    %c1_59 = arith.constant 1 : index
    %c0_60 = arith.constant 0 : index
    %43 = vector.load %arg3[%c0_56, %c0_57, %c1_58, %c1_59, %c0_60] : memref<1x1x4x9x4xf32, #tpu.memory_space<vmem>>, vector<1x1x1x8x4xf32>
    %44 = vector.shape_cast %43 : vector<1x1x1x8x4xf32> to vector<8x4xf32>
    %c7 = arith.constant 7 : index
    %c0_61 = arith.constant 0 : index
    %c0_62 = arith.constant 0 : index
    %45 = vector.load %arg4[%c7, %c0_61, %c0_62] : memref<16x4x128xf32, #tpu.memory_space<vmem>>, vector<1x4x128xf32>
    %46 = vector.shape_cast %45 : vector<1x4x128xf32> to vector<4x128xf32>
    %cst_63 = arith.constant dense<0.000000e+00> : vector<8x128xf32>
    %47 = tpu.matmul %44, %46, %cst_63 {dimension_numbers = #tpu.dot_dimension_numbers<[1], [0], [0], [1], [0, 0, 1, 1], [], []>} : vector<8x4xf32>, vector<4x128xf32>, vector<8x128xf32> -> vector<8x128xf32>
    %48 = arith.addf %42, %47 : vector<8x128xf32>
    %c0_64 = arith.constant 0 : index
    %c0_65 = arith.constant 0 : index
    %c2_66 = arith.constant 2 : index
    %c0_67 = arith.constant 0 : index
    %c0_68 = arith.constant 0 : index
    %49 = vector.load %arg2[%c0_64, %c0_65, %c2_66, %c0_67, %c0_68] : memref<1x1x4x9x4xf32, #tpu.memory_space<vmem>>, vector<1x1x1x8x4xf32>
    %50 = vector.shape_cast %49 : vector<1x1x1x8x4xf32> to vector<8x4xf32>
    %c8 = arith.constant 8 : index
    %c0_69 = arith.constant 0 : index
    %c0_70 = arith.constant 0 : index
    %51 = vector.load %arg4[%c8, %c0_69, %c0_70] : memref<16x4x128xf32, #tpu.memory_space<vmem>>, vector<1x4x128xf32>
    %52 = vector.shape_cast %51 : vector<1x4x128xf32> to vector<4x128xf32>
    %cst_71 = arith.constant dense<0.000000e+00> : vector<8x128xf32>
    %53 = tpu.matmul %50, %52, %cst_71 {dimension_numbers = #tpu.dot_dimension_numbers<[1], [0], [0], [1], [0, 0, 1, 1], [], []>} : vector<8x4xf32>, vector<4x128xf32>, vector<8x128xf32> -> vector<8x128xf32>
    %54 = arith.addf %48, %53 : vector<8x128xf32>
    %c0_72 = arith.constant 0 : index
    %c0_73 = arith.constant 0 : index
    %c2_74 = arith.constant 2 : index
    %c1_75 = arith.constant 1 : index
    %c0_76 = arith.constant 0 : index
    %55 = vector.load %arg2[%c0_72, %c0_73, %c2_74, %c1_75, %c0_76] : memref<1x1x4x9x4xf32, #tpu.memory_space<vmem>>, vector<1x1x1x8x4xf32>
    %56 = vector.shape_cast %55 : vector<1x1x1x8x4xf32> to vector<8x4xf32>
    %c9 = arith.constant 9 : index
    %c0_77 = arith.constant 0 : index
    %c0_78 = arith.constant 0 : index
    %57 = vector.load %arg4[%c9, %c0_77, %c0_78] : memref<16x4x128xf32, #tpu.memory_space<vmem>>, vector<1x4x128xf32>
    %58 = vector.shape_cast %57 : vector<1x4x128xf32> to vector<4x128xf32>
    %cst_79 = arith.constant dense<0.000000e+00> : vector<8x128xf32>
    %59 = tpu.matmul %56, %58, %cst_79 {dimension_numbers = #tpu.dot_dimension_numbers<[1], [0], [0], [1], [0, 0, 1, 1], [], []>} : vector<8x4xf32>, vector<4x128xf32>, vector<8x128xf32> -> vector<8x128xf32>
    %60 = arith.addf %54, %59 : vector<8x128xf32>
    %c0_80 = arith.constant 0 : index
    %c0_81 = arith.constant 0 : index
    %c2_82 = arith.constant 2 : index
    %c0_83 = arith.constant 0 : index
    %c0_84 = arith.constant 0 : index
    %61 = vector.load %arg3[%c0_80, %c0_81, %c2_82, %c0_83, %c0_84] : memref<1x1x4x9x4xf32, #tpu.memory_space<vmem>>, vector<1x1x1x8x4xf32>
    %62 = vector.shape_cast %61 : vector<1x1x1x8x4xf32> to vector<8x4xf32>
    %c10 = arith.constant 10 : index
    %c0_85 = arith.constant 0 : index
    %c0_86 = arith.constant 0 : index
    %63 = vector.load %arg4[%c10, %c0_85, %c0_86] : memref<16x4x128xf32, #tpu.memory_space<vmem>>, vector<1x4x128xf32>
    %64 = vector.shape_cast %63 : vector<1x4x128xf32> to vector<4x128xf32>
    %cst_87 = arith.constant dense<0.000000e+00> : vector<8x128xf32>
    %65 = tpu.matmul %62, %64, %cst_87 {dimension_numbers = #tpu.dot_dimension_numbers<[1], [0], [0], [1], [0, 0, 1, 1], [], []>} : vector<8x4xf32>, vector<4x128xf32>, vector<8x128xf32> -> vector<8x128xf32>
    %66 = arith.addf %60, %65 : vector<8x128xf32>
    %c0_88 = arith.constant 0 : index
    %c0_89 = arith.constant 0 : index
    %c2_90 = arith.constant 2 : index
    %c1_91 = arith.constant 1 : index
    %c0_92 = arith.constant 0 : index
    %67 = vector.load %arg3[%c0_88, %c0_89, %c2_90, %c1_91, %c0_92] : memref<1x1x4x9x4xf32, #tpu.memory_space<vmem>>, vector<1x1x1x8x4xf32>
    %68 = vector.shape_cast %67 : vector<1x1x1x8x4xf32> to vector<8x4xf32>
    %c11 = arith.constant 11 : index
    %c0_93 = arith.constant 0 : index
    %c0_94 = arith.constant 0 : index
    %69 = vector.load %arg4[%c11, %c0_93, %c0_94] : memref<16x4x128xf32, #tpu.memory_space<vmem>>, vector<1x4x128xf32>
    %70 = vector.shape_cast %69 : vector<1x4x128xf32> to vector<4x128xf32>
    %cst_95 = arith.constant dense<0.000000e+00> : vector<8x128xf32>
    %71 = tpu.matmul %68, %70, %cst_95 {dimension_numbers = #tpu.dot_dimension_numbers<[1], [0], [0], [1], [0, 0, 1, 1], [], []>} : vector<8x4xf32>, vector<4x128xf32>, vector<8x128xf32> -> vector<8x128xf32>
    %72 = arith.addf %66, %71 : vector<8x128xf32>
    %c0_96 = arith.constant 0 : index
    %c0_97 = arith.constant 0 : index
    %c3_98 = arith.constant 3 : index
    %c0_99 = arith.constant 0 : index
    %c0_100 = arith.constant 0 : index
    %73 = vector.load %arg2[%c0_96, %c0_97, %c3_98, %c0_99, %c0_100] : memref<1x1x4x9x4xf32, #tpu.memory_space<vmem>>, vector<1x1x1x8x4xf32>
    %74 = vector.shape_cast %73 : vector<1x1x1x8x4xf32> to vector<8x4xf32>
    %c12 = arith.constant 12 : index
    %c0_101 = arith.constant 0 : index
    %c0_102 = arith.constant 0 : index
    %75 = vector.load %arg4[%c12, %c0_101, %c0_102] : memref<16x4x128xf32, #tpu.memory_space<vmem>>, vector<1x4x128xf32>
    %76 = vector.shape_cast %75 : vector<1x4x128xf32> to vector<4x128xf32>
    %cst_103 = arith.constant dense<0.000000e+00> : vector<8x128xf32>
    %77 = tpu.matmul %74, %76, %cst_103 {dimension_numbers = #tpu.dot_dimension_numbers<[1], [0], [0], [1], [0, 0, 1, 1], [], []>} : vector<8x4xf32>, vector<4x128xf32>, vector<8x128xf32> -> vector<8x128xf32>
    %78 = arith.addf %72, %77 : vector<8x128xf32>
    %c0_104 = arith.constant 0 : index
    %c0_105 = arith.constant 0 : index
    %c3_106 = arith.constant 3 : index
    %c1_107 = arith.constant 1 : index
    %c0_108 = arith.constant 0 : index
    %79 = vector.load %arg2[%c0_104, %c0_105, %c3_106, %c1_107, %c0_108] : memref<1x1x4x9x4xf32, #tpu.memory_space<vmem>>, vector<1x1x1x8x4xf32>
    %80 = vector.shape_cast %79 : vector<1x1x1x8x4xf32> to vector<8x4xf32>
    %c13 = arith.constant 13 : index
    %c0_109 = arith.constant 0 : index
    %c0_110 = arith.constant 0 : index
    %81 = vector.load %arg4[%c13, %c0_109, %c0_110] : memref<16x4x128xf32, #tpu.memory_space<vmem>>, vector<1x4x128xf32>
    %82 = vector.shape_cast %81 : vector<1x4x128xf32> to vector<4x128xf32>
    %cst_111 = arith.constant dense<0.000000e+00> : vector<8x128xf32>
    %83 = tpu.matmul %80, %82, %cst_111 {dimension_numbers = #tpu.dot_dimension_numbers<[1], [0], [0], [1], [0, 0, 1, 1], [], []>} : vector<8x4xf32>, vector<4x128xf32>, vector<8x128xf32> -> vector<8x128xf32>
    %84 = arith.addf %78, %83 : vector<8x128xf32>
    %c0_112 = arith.constant 0 : index
    %c0_113 = arith.constant 0 : index
    %c3_114 = arith.constant 3 : index
    %c0_115 = arith.constant 0 : index
    %c0_116 = arith.constant 0 : index
    %85 = vector.load %arg3[%c0_112, %c0_113, %c3_114, %c0_115, %c0_116] : memref<1x1x4x9x4xf32, #tpu.memory_space<vmem>>, vector<1x1x1x8x4xf32>
    %86 = vector.shape_cast %85 : vector<1x1x1x8x4xf32> to vector<8x4xf32>
    %c14 = arith.constant 14 : index
    %c0_117 = arith.constant 0 : index
    %c0_118 = arith.constant 0 : index
    %87 = vector.load %arg4[%c14, %c0_117, %c0_118] : memref<16x4x128xf32, #tpu.memory_space<vmem>>, vector<1x4x128xf32>
    %88 = vector.shape_cast %87 : vector<1x4x128xf32> to vector<4x128xf32>
    %cst_119 = arith.constant dense<0.000000e+00> : vector<8x128xf32>
    %89 = tpu.matmul %86, %88, %cst_119 {dimension_numbers = #tpu.dot_dimension_numbers<[1], [0], [0], [1], [0, 0, 1, 1], [], []>} : vector<8x4xf32>, vector<4x128xf32>, vector<8x128xf32> -> vector<8x128xf32>
    %90 = arith.addf %84, %89 : vector<8x128xf32>
    %c0_120 = arith.constant 0 : index
    %c0_121 = arith.constant 0 : index
    %c3_122 = arith.constant 3 : index
    %c1_123 = arith.constant 1 : index
    %c0_124 = arith.constant 0 : index
    %91 = vector.load %arg3[%c0_120, %c0_121, %c3_122, %c1_123, %c0_124] : memref<1x1x4x9x4xf32, #tpu.memory_space<vmem>>, vector<1x1x1x8x4xf32>
    %92 = vector.shape_cast %91 : vector<1x1x1x8x4xf32> to vector<8x4xf32>
    %c15 = arith.constant 15 : index
    %c0_125 = arith.constant 0 : index
    %c0_126 = arith.constant 0 : index
    %93 = vector.load %arg4[%c15, %c0_125, %c0_126] : memref<16x4x128xf32, #tpu.memory_space<vmem>>, vector<1x4x128xf32>
    %94 = vector.shape_cast %93 : vector<1x4x128xf32> to vector<4x128xf32>
    %cst_127 = arith.constant dense<0.000000e+00> : vector<8x128xf32>
    %95 = tpu.matmul %92, %94, %cst_127 {dimension_numbers = #tpu.dot_dimension_numbers<[1], [0], [0], [1], [0, 0, 1, 1], [], []>} : vector<8x4xf32>, vector<4x128xf32>, vector<8x128xf32> -> vector<8x128xf32>
    %96 = arith.addf %90, %95 : vector<8x128xf32>
    %c0_128 = arith.constant 0 : index
    %c0_129 = arith.constant 0 : index
    %97 = vector.load %arg5[%c0_128, %c0_129] : memref<1x128xf32, #tpu.memory_space<vmem>>, vector<1x128xf32>
    %98 = vector.broadcast %97 : vector<1x128xf32> to vector<8x128xf32>
    %99 = arith.addf %96, %98 : vector<8x128xf32>
    %c0_130 = arith.constant 0 : index
    %c0_131 = arith.constant 0 : index
    %c0_132 = arith.constant 0 : index
    %c0_133 = arith.constant 0 : index
    %100 = vector.load %arg6[%c0_130, %c0_131, %c0_132, %c0_133] : memref<1x1x8x128xf32, #tpu.memory_space<vmem>>, vector<1x1x8x128xf32>
    %101 = vector.shape_cast %100 : vector<1x1x8x128xf32> to vector<8x128xf32>
    %102 = vector.shape_cast %99 : vector<8x128xf32> to vector<1x1x8x128xf32>
    tpu.vector_store %arg6[%c0_130, %c0_131, %c0_132, %c0_133], %102 {strides = array<i32>} : memref<1x1x8x128xf32, #tpu.memory_space<vmem>>, vector<1x1x8x128xf32>,
    return
  }
  func.func @transform_0(%arg0: i32, %arg1: i32) -> (i32, i32, i32, i32, i32) {
    %c0_i32 = arith.constant 0 : i32
    %c0_i32_0 = arith.constant 0 : i32
    %c0_i32_1 = arith.constant 0 : i32
    %c0_i32_2 = arith.constant 0 : i32
    return %arg0, %arg1, %c0_i32, %c0_i32_0, %c0_i32_1 : i32, i32, i32, i32, i32
  }
  func.func @transform_1(%arg0: i32, %arg1: i32) -> (i32, i32, i32, i32, i32) {
    %c1_i32 = arith.constant 1 : i32
    %0 = arith.addi %arg1, %c1_i32 : i32
    %c0_i32 = arith.constant 0 : i32
    %c0_i32_0 = arith.constant 0 : i32
    %c0_i32_1 = arith.constant 0 : i32
    %c0_i32_2 = arith.constant 0 : i32
    return %arg0, %0, %c0_i32, %c0_i32_0, %c0_i32_1 : i32, i32, i32, i32, i32
  }
  func.func @transform_2(%arg0: i32, %arg1: i32) -> (i32, i32, i32) {
    %c0_i32 = arith.constant 0 : i32
    %c0_i32_0 = arith.constant 0 : i32
    %c0_i32_1 = arith.constant 0 : i32
    %c0_i32_2 = arith.constant 0 : i32
    return %c0_i32, %c0_i32_0, %c0_i32_1 : i32, i32, i32
  }
  func.func @transform_3(%arg0: i32, %arg1: i32) -> (i32, i32) {
    %c0_i32 = arith.constant 0 : i32
    %c0_i32_0 = arith.constant 0 : i32
    %c0_i32_1 = arith.constant 0 : i32
    return %c0_i32, %c0_i32_0 : i32, i32
  }
  func.func @transform_4(%arg0: i32, %arg1: i32) -> (i32, i32, i32, i32) {
    %c0_i32 = arith.constant 0 : i32
    %c0_i32_0 = arith.constant 0 : i32
    %c0_i32_1 = arith.constant 0 : i32
    return %arg0, %arg1, %c0_i32, %c0_i32_0 : i32, i32, i32, i32
  }
}

</mosaic_0001>

<bundles_post_ra>
// kernel: tpu_custom_call.1
= control target key start
LH: loop header
LB: loop body
LE: loop exit
PB: predicated region body
PF: predicated region fallthrough
CT: control target
= control target key end

     0   :  { %9 = vsyncpa [#allocation3], 0  ;;  %s2339_s0 = inlined_call_operand.vmem [shape: f32[2,9,4,9,4], index: 0, kind: input, shape index: {}]   ;;  %s2340_s1 = inlined_call_operand.vmem [shape: f32[2,9,4,9,4], index: 1, kind: input, shape index: {}]   ;;  %s2341_s2 = inlined_call_operand.vmem [shape: f32[16,4,128], index: 2, kind: input, shape index: {}]   ;;  %s2342_s3 = inlined_call_operand.vmem [shape: f32[1,128], index: 3, kind: input, shape index: {}]   ;;  %s2343_s4 = inlined_call_operand.hbm [shape: f32[2,8,8,128], index: 4, kind: output, shape index: {}]  }
   0x1   :  { %11 = vsyncpa [#allocation3 + $0x1], 0  ;;  %s2060_s15 = smov 0   ;;  %s2062_s16 = smov 0  }
   0x2   :  { %s2064_s17 = smov 0   ;;  %s2066_s18 = smov 0  }
   0x3   :  { %s2068_s19 = smov 0   ;;  %s2070_s20 = smov 0  }
   0x4   :  { %s2072_s21 = smov 0   ;;  %s2074_s22 = smov 0  }
   0x5 LB: > { %s1677_s23 = sadd.s32 4294967295, %s2030_s22   ;;  %s1678_s24 = sadd.s32 4294967294, %s2030_s22   ;;  %s2030_s22 = sphi %s2074_s22, %s17_s22   ;;  %s2026_s21 = sphi %s2072_s21, %s2352_s21   ;;  %s2022_s20 = sphi %s2070_s20, %s2351_s20   ;;  %s2018_s19 = sphi %s2068_s19, %s2350_s19   ;;  %s2014_s18 = sphi %s2066_s18, %s2349_s18   ;;  %s2010_s17 = sphi %s2064_s17, %s2348_s17   ;;  %s2006_s16 = sphi %s2062_s16, %s2347_s16   ;;  %s2002_s15 = sphi %s2060_s15, %s2346_s15  }
   0x6   : > { %s26_s25 = sadd.s32 1, %s2022_s20  ;;  %s29_s26 = sadd.s32 1, %s2026_s21 }
   0x7   : > { %p27_p0 = scmp.ge.s32.totalorder %s26_s25, 8  ;;  %p148_p1 = scmp.ne.s32.totalorder %s2010_s17, %s2006_s16 }
   0x8   : > { %p149_p2 = scmp.eq.s32.totalorder %s1677_s23, 15  ;;  %p154_p5 = scmp.ne.s32.totalorder %s2006_s16, %s2002_s15 }
   0x9   : > { %s2354_s25 = smov (%p27_p0, %s26_s25), 0  ;;  %s2356_s26 = smov (!%p27_p0, %s29_s26), %s2026_s21 }
   0xa   : > { %s134_s27 = ssub.s32 %s2022_s20, %s2354_s25  ;;  %p2111_p3 = por %p149_p2, %p148_p1 }
   0xb   : > { %p31_p4 = scmp.ge.s32.totalorder %s2356_s26, 2  ;;  %p155_p6 = scmp.eq.s32.totalorder %s1678_s24, 15 }
   0xc   : > { %p1681_p7 = scmp.ge.s32.totalorder %s2030_s22, 1  ;;  %p205_p9 = scmp.lt.s32.totalorder %s2030_s22, 17 }
   0xd   : > { %s2358_s26 = smov (%p31_p4, %s2356_s26), 0  ;;  %p2120_p8 = por %p155_p6, %p154_p5 }
   0xe   : > { %s133_s30 = ssub.s32 %s2026_s21, %s2358_s26  ;;  %s138_s5 = sadd.s32 1, %s2010_s17 }
   0xf   : > { %s135_s6 = sor.u32 %s134_s27, %s133_s30  ;;  %p206_p10 = pnand %p1681_p7, %p205_p9 }
  0x10   : > { %p136_p11 = scmp.eq.s32.totalorder %s135_s6, 0  ;;  %p245_p12 = scmp.lt.s32.totalorder (!%p206_p10), %s2018_s19, 1 }
  0x11   : > { %209 = sbr.rel (%p206_p10) target bundleno = 271 (0x10f), region = 36  ;;  %p247_p13 = scmp.lt.s32.totalorder (!%p206_p10), %s2014_s18, 8 }
  0x12   : > { %s2129_s7 = scalar_select %p136_p11, %s2010_s17, %s138_s5  }
  0x13   : > { %s254_s23 = sadd.s32 (!%p206_p10), 1, %s2014_s18  ;;  %s1748_s10 = sshll.u32 (!%p206_p10), %s2018_s19, 3 }
  0x14   : > { %p257_p0 = scmp.lt.s32.totalorder (!%p206_p10), %s254_s23, 8  ;;  %s1571_s11 = sadd.s32 (!%p206_p10), %s2014_s18, %s1748_s10 }
  0x15   : > { %s2034_s9 = smov (!%p206_p10), [#allocation2]  }
  0x16   : > { %v1687_v0 = vld [vmem:[%s2341_s2 + $0x4] sm:$0xf]  ;;  %vm274_vm0 = vcmask 1043456   ;;  %v2032_v1 = vmov 0.0   ;;  %v266_v2 = vld [vmem:[%s2341_s2] sm:$0xf] }
  0x17   : > { %1784 = vmatprep.subr.mxu0 %v2032_v1  ;;  %1789 = vmatprep.subr.mxu1 %v2032_v1  ;;  %vm2033_vm1 = vmmov 0   ;;  %s246_s12 = scalar_select %p245_p12, %s2018_s19, 1  ;;  %vm270_vm2 = vcmask 31744   ;;  %v1692_v3 = vld [vmem:[%s2341_s2 + $0x8] sm:$0xf] }
  0x18   : > { %1785 = vmatpush3.msk.msra.mxu0 %vm274_vm0, %v1687_v0  ;;  %1786 = vmatprep.mubr.msk.f32.mxu0 %vm2033_vm1, %v2032_v1  ;;  %s248_s13 = scalar_select %p247_p13, %s2014_s18, 8  ;;  %v1695_v4 = vld [vmem:[%s2341_s2 + $0xc] sm:$0xf]  ;;  %v1699_v7 = vld [vmem:[%s2341_s2 + $0x10] sm:$0xf] }
  0x19   : > { %1790 = vmatpush3.msk.msra.mxu1 %vm274_vm0, %v266_v2  ;;  %1791 = vmatprep.mubr.msk.f32.mxu1 %vm2033_vm1, %v2032_v1  ;;  %s1864_s14 = smul.u32 72, %s246_s12  ;;  %s2360_s23 = smov (!%p257_p0, %s254_s23), 8  ;;  %v1703_v8 = vld [vmem:[%s2341_s2 + $0x14] sm:$0xf]  ;;  %v1707_v13 = vld [vmem:[%s2341_s2 + $0x18] sm:$0xf] }
  0x1a   : > { %1794 = vmatprep.subr.mxu0 %v2032_v1  ;;  %1799 = vmatprep.subr.mxu1 %v2032_v1  ;;  %s1683_s24 = sshll.u32 %s248_s13, 3  ;;  %s1685_s13 = sshll.u32 %s2360_s23, 3  ;;  %v1711_v14 = vld [vmem:[%s2341_s2 + $0x1c] sm:$0xf]  ;;  %v1715_v17 = vld [vmem:[%s2341_s2 + $0x20] sm:$0xf] }
  0x1b   : > { %s251_s27 = sadd.s32 %s1864_s14, %s1683_s24  ;;  %s261_s24 = sadd.s32 %s1864_s14, %s1685_s13  ;;  %v1719_v18 = vld [vmem:[%s2341_s2 + $0x24] sm:$0xf]  ;;  %v1723_v21 = vld [vmem:[%s2341_s2 + $0x28] sm:$0xf]  ;;  %v1727_v22 = vld [vmem:[%s2341_s2 + $0x2c] sm:$0xf] }
  0x1c   : > { %s1684_s30 = sshll.u32 %s251_s27, 3  ;;  %s1686_s27 = sshll.u32 %s261_s24, 3  ;;  %v1731_v25 = vld [vmem:[%s2341_s2 + $0x30] sm:$0xf]  ;;  %v1735_v26 = vld [vmem:[%s2341_s2 + $0x34] sm:$0xf] }
  0x1d   : > { %s2155_s8 = scalar_lea.vmem %s2339_s0, %s1684_s30  ;;  %s2178_s6 = scalar_lea.vmem %s2340_s1, %s1686_s27  ;;  %v1739_v29 = vld [vmem:[%s2341_s2 + $0x38] sm:$0xf]  ;;  %v1743_v30 = vld [vmem:[%s2341_s2 + $0x3c] sm:$0xf] }
  0x1e   : > { %v267_v5 = vld [vmem:[%s2155_s8 + $0x1] sm:$0xff]  ;;  %v1698_v11 = vld [vmem:[%s2155_s8 + $0x10] sm:$0xff]  ;;  %s1749_s13 = sshll.u32 %s1571_s11, 7  ;;  %s1942_s10 = sshll.u32 %s2034_s9, 4  ;;  %s1943_s10 = int_to_ptr.vmem [resolvable:$false] %s1942_s10 }
  0x1f   : > { %v265_v6 = vld [vmem:[%s2155_s8] sm:$0xff]  ;;  %1787 = vmatmul.mubr.msk.f32.vlgmr.msra.gmra.mxu0 %vm270_vm2, %v267_v5  ;;  %v1702_v12 = vld [vmem:[%s2155_s8 + $0x11] sm:$0xff]  ;;  %s1573_s5 = scalar_lea.hbm %s2343_s4, %s1749_s13  ;;  %s1944_s11 = scalar_lea.vmem %s1943_s10, 256 }
  0x20   : > { %1792 = vmatmul.mubr.msk.f32.vlgmr.msra.gmra.mxu1 %vm270_vm2, %v265_v6  ;;  %1795 = vmatpush3.msk.msra.mxu0 %vm274_vm0, %v1692_v3  ;;  %v424_v9 = vld [vmem:[%s2178_s6] sm:$0xff]  ;;  %v1706_v15 = vld [vmem:[%s2178_s6 + $0x10] sm:$0xff] }
  0x21   : > { %1800 = vmatpush3.msk.msra.mxu1 %vm274_vm0, %v1695_v4  ;;  %1796 = vmatprep.mubr.msk.f32.mxu0 %vm2033_vm1, %v2032_v1  ;;  %v504_v10 = vld [vmem:[%s2178_s6 + $0x1] sm:$0xff]  ;;  %v1710_v16 = vld [vmem:[%s2178_s6 + $0x11] sm:$0xff] }
  0x22   : > { %1801 = vmatprep.mubr.msk.f32.mxu1 %vm2033_vm1, %v2032_v1  ;;  %1804 = vmatprep.subr.mxu0 %v2032_v1  ;;  %v1714_v19 = vld [vmem:[%s2155_s8 + $0x20] sm:$0xff]  ;;  %v1730_v27 = vld [vmem:[%s2155_s8 + $0x30] sm:$0xff] }
  0x23   : > { %1809 = vmatprep.subr.mxu1 %v2032_v1  ;;  %1797 = vmatmul.mubr.msk.f32.vlgmr.msra.gmra.mxu0 %vm270_vm2, %v424_v9  ;;  %v1718_v20 = vld [vmem:[%s2155_s8 + $0x21] sm:$0xff]  ;;  %v1734_v28 = vld [vmem:[%s2155_s8 + $0x31] sm:$0xff]  ;;  %s242_s8 = sand.u32 1, %s2006_s16  }
  0x24   : > { %1802 = vmatmul.mubr.msk.f32.vlgmr.msra.gmra.mxu1 %vm270_vm2, %v504_v10  ;;  %1805 = vmatpush3.msk.msra.mxu0 %vm274_vm0, %v1699_v7  ;;  %v1722_v23 = vld [vmem:[%s2178_s6 + $0x20] sm:$0xff]  ;;  %v1738_v31 = vld [vmem:[%s2178_s6 + $0x30] sm:$0xff]  ;;  %s1560_s18 = scalar_lea.sflag [#allocation3], %s242_s8 }
  0x25   : > { %1810 = vmatpush3.msk.msra.mxu1 %vm274_vm0, %v1703_v8  ;;  %1806 = vmatprep.mubr.msk.f32.mxu0 %vm2033_vm1, %v2032_v1  ;;  %v1726_v24 = vld [vmem:[%s2178_s6 + $0x21] sm:$0xff]  ;;  %v1742_v32 = vld [vmem:[%s2178_s6 + $0x31] sm:$0xff]  ;;  %s1682_s6 = sshll.u32 %s242_s8, 3 }
  0x26   : > { %1811 = vmatprep.mubr.msk.f32.mxu1 %vm2033_vm1, %v2032_v1  ;;  %1814 = vmatprep.subr.mxu0 %v2032_v1  ;;  %s244_s24 = scalar_lea.vmem [#allocation2], %s1682_s6 }
  0x27   : > { %1819 = vmatprep.subr.mxu1 %v2032_v1  ;;  %1807 = vmatmul.mubr.msk.f32.vlgmr.msra.gmra.mxu0 %vm270_vm2, %v1698_v11  ;;  %s1575_s27 = sshll.u32 %s244_s24, 4  ;;  %s1576_s27 = int_to_ptr.vmem [resolvable:$true] %s1575_s27 }
  0x28   : > { %1812 = vmatmul.mubr.msk.f32.vlgmr.msra.gmra.mxu1 %vm270_vm2, %v1702_v12  ;;  %1815 = vmatpush3.msk.msra.mxu0 %vm274_vm0, %v1707_v13  ;;  %v1746_v13 = vld [vmem:[%s2342_s3] ss:$0 sm:$0xff]  ;;  %s1938_s23 = scalar_lea.vmem %s1576_s27, 128  ;;  %p1945_p5 = scmp.lt.s32.totalorder %s1576_s27, %s1943_s10 }
  0x29   : > { %1820 = vmatpush3.msk.msra.mxu1 %vm274_vm0, %v1711_v14  ;;  %1816 = vmatprep.mubr.msk.f32.mxu0 %vm2033_vm1, %v2032_v1  ;;  %p1939_p1 = scmp.ne.s32.totalorder %s1576_s27, %s1938_s23  ;;  %p1946_p6 = scmp.lt.s32.totalorder %s1944_s11, %s1938_s23 }
  0x2a   : > { %1821 = vmatprep.mubr.msk.f32.mxu1 %vm2033_vm1, %v2032_v1  ;;  %1824 = vmatprep.subr.mxu0 %v2032_v1 }
  0x2b   : > { %1829 = vmatprep.subr.mxu1 %v2032_v1  ;;  %1817 = vmatmul.mubr.msk.f32.vlgmr.msra.gmra.mxu0 %vm270_vm2, %v1706_v15  ;;  %p1940_p2 = pnand %p1939_p1, %p2111_p3  ;;  %p1947_p7 = por %p1946_p6, %p1945_p5 }
  0x2c   : > { %1822 = vmatmul.mubr.msk.f32.vlgmr.msra.gmra.mxu1 %vm270_vm2, %v1710_v16  ;;  %1825 = vmatpush3.msk.msra.mxu0 %vm274_vm0, %v1715_v17 }
  0x2d   : > { %1830 = vmatpush3.msk.msra.mxu1 %vm274_vm0, %v1719_v18  ;;  %1826 = vmatprep.mubr.msk.f32.mxu0 %vm2033_vm1, %v2032_v1  ;;  %p1941_p4 = pneg %p1940_p2 }
  0x2e   : > { %1831 = vmatprep.mubr.msk.f32.mxu1 %vm2033_vm1, %v2032_v1  ;;  %1834 = vmatprep.subr.mxu0 %v2032_v1 }
  0x2f   : > { %1839 = vmatprep.subr.mxu1 %v2032_v1  ;;  %1827 = vmatmul.mubr.msk.f32.vlgmr.msra.gmra.mxu0 %vm270_vm2, %v1714_v19  ;;  %p1948_p9 = pnand %p1947_p7, %p1941_p4 }
  0x30   : > { %1832 = vmatmul.mubr.msk.f32.vlgmr.msra.gmra.mxu1 %vm270_vm2, %v1718_v20  ;;  %1835 = vmatpush3.msk.msra.mxu0 %vm274_vm0, %v1723_v21 }
  0x31   : > { %1840 = vmatpush3.msk.msra.mxu1 %vm274_vm0, %v1727_v22  ;;  %1836 = vmatprep.mubr.msk.f32.mxu0 %vm2033_vm1, %v2032_v1 }
  0x32   : > { %1841 = vmatprep.mubr.msk.f32.mxu1 %vm2033_vm1, %v2032_v1  ;;  %1844 = vmatprep.subr.mxu0 %v2032_v1 }
  0x33   : > { %1849 = vmatprep.subr.mxu1 %v2032_v1  ;;  %1837 = vmatmul.mubr.msk.f32.vlgmr.msra.gmra.mxu0 %vm270_vm2, %v1722_v23 }
  0x34   : > { %1842 = vmatmul.mubr.msk.f32.vlgmr.msra.gmra.mxu1 %vm270_vm2, %v1726_v24  ;;  %1845 = vmatpush3.msk.msra.mxu0 %vm274_vm0, %v1731_v25 }
  0x35   : > { %1850 = vmatpush3.msk.msra.mxu1 %vm274_vm0, %v1735_v26  ;;  %1846 = vmatprep.mubr.msk.f32.mxu0 %vm2033_vm1, %v2032_v1 }
  0x36   : > { %1851 = vmatprep.mubr.msk.f32.mxu1 %vm2033_vm1, %v2032_v1  ;;  %1854 = vmatprep.subr.mxu0 %v2032_v1 }
  0x37   : > { %1859 = vmatprep.subr.mxu1 %v2032_v1  ;;  %1847 = vmatmul.mubr.msk.f32.vlgmr.msra.gmra.mxu0 %vm270_vm2, %v1730_v27 }
  0x38   : > { %1852 = vmatmul.mubr.msk.f32.vlgmr.msra.gmra.mxu1 %vm270_vm2, %v1734_v28  ;;  %1855 = vmatpush3.msk.msra.mxu0 %vm274_vm0, %v1739_v29 }
  0x39   : > { %1860 = vmatpush3.msk.msra.mxu1 %vm274_vm0, %v1743_v30  ;;  %1856 = vmatprep.mubr.msk.f32.mxu0 %vm2033_vm1, %v2032_v1 }
  0x3a   : > { %1861 = vmatprep.mubr.msk.f32.mxu1 %vm2033_vm1, %v2032_v1 }
  0x3b   : > { %1857 = vmatmul.mubr.msk.f32.vlgmr.msra.gmra.mxu0 %vm270_vm2, %v1738_v31 }
  0x3c   : > { %1862 = vmatmul.mubr.msk.f32.vlgmr.msra.gmra.mxu1 %vm270_vm2, %v1742_v32 }
  0xdf   : > { %v344_v33 = vpop.f32.mrf.mxu0 }
  0xe0   : > { %v420_v34 = vpop.f32.mrf.mxu1 }
  0xe1   : > { %v1788_v35 = vpop.f32.mrf.mxu0  ;;  %v421_v37 = vadd.f32 %v420_v34, %v344_v33 }
  0xe2   : > { %v1793_v36 = vpop.f32.mrf.mxu1 }
  0xe3   : > { %v499_v38 = vpop.f32.mrf.mxu0 }
  0xe4   : > { %v579_v39 = vpop.f32.mrf.mxu1  ;;  %v503_v40 = vadd.f32 %v499_v38, %v421_v37 }
  0xe5   : > { %v1798_v41 = vpop.f32.mrf.mxu0 }
  0xe6   : > { %v1803_v42 = vpop.f32.mrf.mxu1  ;;  %v583_v43 = vadd.f32 %v579_v39, %v503_v40 }
  0xe7   : > { %v660_v44 = vpop.f32.mrf.mxu0 }
  0xe8   : > { %v740_v45 = vpop.f32.mrf.mxu1  ;;  %v664_v46 = vadd.f32 %v660_v44, %v583_v43 }
  0xe9   : > { %v1808_v47 = vpop.f32.mrf.mxu0 }
  0xea   : > { %v1813_v48 = vpop.f32.mrf.mxu1  ;;  %v744_v49 = vadd.f32 %v740_v45, %v664_v46 }
  0xeb   : > { %v821_v50 = vpop.f32.mrf.mxu0 }
  0xec   : > { %v901_v51 = vpop.f32.mrf.mxu1  ;;  %v825_v52 = vadd.f32 %v821_v50, %v744_v49 }
  0xed   : > { %v1818_v53 = vpop.f32.mrf.mxu0 }
  0xee   : > { %v1823_v54 = vpop.f32.mrf.mxu1  ;;  %v905_v55 = vadd.f32 %v901_v51, %v825_v52 }
  0xef   : > { %v982_v56 = vpop.f32.mrf.mxu0 }
  0xf0   : > { %v1062_v57 = vpop.f32.mrf.mxu1  ;;  %v986_v58 = vadd.f32 %v982_v56, %v905_v55 }
  0xf1   : > { %v1828_v59 = vpop.f32.mrf.mxu0 }
  0xf2   : > { %v1833_v60 = vpop.f32.mrf.mxu1  ;;  %v1066_v61 = vadd.f32 %v1062_v57, %v986_v58 }
  0xf3   : > { %v1143_v62 = vpop.f32.mrf.mxu0 }
  0xf4   : > { %v1223_v63 = vpop.f32.mrf.mxu1  ;;  %v1147_v0 = vadd.f32 %v1143_v62, %v1066_v61 }
  0xf5   : > { %v1838_v1 = vpop.f32.mrf.mxu0 }
  0xf6   : > { %v1843_v2 = vpop.f32.mrf.mxu1  ;;  %v1227_v3 = vadd.f32 %v1223_v63, %v1147_v0 }
  0xf7   : > { %v1304_v4 = vpop.f32.mrf.mxu0 }
  0xf8   : > { %v1384_v5 = vpop.f32.mrf.mxu1  ;;  %v1308_v6 = vadd.f32 %v1304_v4, %v1227_v3 }
  0xf9   : > { %v1848_v7 = vpop.f32.mrf.mxu0 }
  0xfa   : > { %v1853_v8 = vpop.f32.mrf.mxu1  ;;  %v1388_v9 = vadd.f32 %v1384_v5, %v1308_v6 }
  0xfb   : > { %v1465_v10 = vpop.f32.mrf.mxu0 }
  0xfc   : > { %v1545_v11 = vpop.f32.mrf.mxu1  ;;  %v1469_v12 = vadd.f32 %v1465_v10, %v1388_v9 }
  0xfd   : > { %v1858_v14 = vpop.f32.mrf.mxu0 }
  0xfe   : > { %v1863_v15 = vpop.f32.mrf.mxu1  ;;  %v1549_v16 = vadd.f32 %v1545_v11, %v1469_v12 }
 0x100   : > { %v1557_v17 = vadd.f32 %v1746_v13, %v1549_v16 }
 0x102   : > { %1558 = vst [vmem:[%s244_s24] sm:$0xff] %v1557_v17 }
 0x103   : > { %1951 = shalt.err (!%p1948_p9)
}
 0x104   : > { %s1952_s6 = scalar_lea.hbm %s1573_s5, 128  ;;  %s1956_s12 = scalar_lea.hbm %s2343_s4, 2048 }
 0x105   : > { %p1953_p10 = scmp.ne.s32.totalorder %s1573_s5, %s1952_s6  ;;  %p1957_p13 = scmp.lt.s32.totalorder %s1573_s5, %s2343_s4 }
 0x106   : > { %p1958_p0 = scmp.lt.s32.totalorder %s1956_s12, %s1952_s6 }
 0x107   : > { %p1954_p11 = pnand %p1953_p10, %p2111_p3 }
 0x108   : > { %p1959_p1 = por %p1958_p0, %p1957_p13 }
 0x109   : > { %p1955_p12 = pneg %p1954_p11 }
 0x10b   : > { %p1960_p2 = pnand %p1959_p1, %p1955_p12 }
 0x10d   : > { %1963 = shalt.err (!%p1960_p2)
}
 0x10e   : > { %1865 = dma.vmem_to_hbm [thread:$0]  (%p2111_p3), %s1576_s27, 128, %s1573_s5, %s1560_s18  }
 0x10f PF: > { %p1871_p4 = scmp.ge.s32.totalorder %s2030_s22, 2  ;;  %s1587_s19 = sand.u32 1, %s2002_s15  }
 0x110   : > { %s1588_s30 = scalar_lea.sflag [#allocation3], %s1587_s19 }
 0x111   : > { %p1868_p5 = pnand %p1871_p4, %p2120_p8 }
 0x113   : > { %p1869_p6 = pneg %p1868_p5 }
 0x115   : > { %1997 = dma.done.wait (%p1869_p6), %s1588_s30, 128  }
 0x116   : > { %1999 = vsyncadd (%p1869_p6), %s1588_s30, 4294967168  ;;  %s17_s22 = sadd.s32 1, %s2030_s22   ;;  %s2346_s15 = smov %s2006_s16 }
 0x117   : > { %p14_p7 = scmp.ge.s32.totalorder %s17_s22, 18   ;;  %s2347_s16 = smov %s2010_s17 }
 0x118   : > { %s2348_s17 = smov %s2129_s7  ;;  %s2349_s18 = smov %s2022_s20 }
 0x119   : > { %s2350_s19 = smov %s2026_s21  ;;  %s2351_s20 = smov %s2354_s25 }
 0x11a   : > { %s2352_s21 = smov %s2358_s26  ;;  %16 = sbr.rel (!%p14_p7) target bundleno = 5 (0x5), region = 95 }
 0x11f   :  { %1593 = vsyncpa [#allocation3], 1 }
 0x120   :  { %1595 = vsyncpa [#allocation3 + $0x1], 1 }

</bundles_post_ra>
